<compile_context>
chip_gen: v6e
topology: v6e:2x2x1
jax: 0.10.0
libtpu: 0.0.40
codegen_flags: <defaults>
</compile_context>

<pallas_src>
import math

import jax
import jax.numpy as jnp
from jax.experimental import pallas as pl
from jax.experimental.pallas import tpu as pltpu


def _round_up(x, m):
    return ((x + m - 1) // m) * m


# Conservative per-call VMEM budget (bytes) for the pipelined buffers.  v7x has
# only 64 MiB physical VMEM per TensorCore; ~20 MiB of tiles (double-buffered
# adj + support + output) leaves comfortable headroom on every generation.
_VMEM_TILE_BUDGET = 20 * 1024 * 1024
_VMEM_LIMIT_BYTES = 40 * 1024 * 1024


def _choose_tiles(n_pad, f_pad):
    """Pick (tn, tk): output-row / contraction tiles of the adjacency matmul.

    The kernel is HBM-bound on the B*N*N adjacency stream, so we want the
    largest tiles that (a) divide the padded node count and (b) keep the
    double-buffered working set under the VMEM budget.
    """
    best = (256, 256)
    best_area = 0
    for tn in (2048, 1024, 512, 256):
        if n_pad % tn:
            continue
        for tk in (2048, 1024, 512, 256):
            if n_pad % tk:
                continue
            vmem = (2 * tn * tk * 2          # adj tile, bf16, double-buffered
                    + 2 * tk * f_pad * 2     # support tile, bf16, double-buffered
                    + 2 * tn * f_pad * 4     # output tile, f32, double-buffered
                    + f_pad * 4)             # bias
            if vmem <= _VMEM_TILE_BUDGET and tn * tk > best_area:
                best, best_area = (tn, tk), tn * tk
    return best


def _gcn_kernel(s_ref, adj_ref, b_ref, o_ref):
    # s_ref:   (tk, F_pad)  bf16  support = (x @ W) slice for this k-tile
    # adj_ref: (tn, tk)     bf16  adjacency tile (output rows x contraction)
    # b_ref:   (1, F_pad)   f32   shared bias (lane-padded)
    # o_ref:   (tn, F_pad)  f32   output tile, resident across the k axis
    k = pl.program_id(2)

    @pl.when(k == 0)
    def _init():
        o_ref[...] = jnp.zeros_like(o_ref)

    # Single MXU matmul per grid step; f32 accumulation directly in the output
    # block (no separate accumulator scratch, no finalize copy).
    o_ref[...] += jnp.dot(adj_ref[...], s_ref[...],
                          preferred_element_type=jnp.float32)

    @pl.when(k == pl.num_programs(2) - 1)
    def _bias():
        o_ref[...] += b_ref[...]


@jax.jit
def graph_convolution(x, adj, weight, bias):
    """x: (B, H, W, F_in), adj: (B, N, N) with N = H*W, weight: (F_in, F_out).

    Returns (B, H, W, F_out) in float32 (F_out == F_in for the module's reshape).
    """
    B, H, Wd, F_in = x.shape
    N = H * Wd
    F_out = weight.shape[1]
    F_pad = _round_up(F_out, 128)     # lane-dense, unmasked vst stores
    N_pad = _round_up(N, 256)         # zero-padded adj rows/cols are harmless

    tn, tk = _choose_tiles(N_pad, F_pad)
    grid = (B, N_pad // tn, N_pad // tk)

    # --- Hoisted support matmul: computed once in f32 by XLA (tiny vs. the
    # adj matmul), then a single rounding to bf16 for the kernel's HBM stream.
    x_flat = x.reshape(B, N, F_in).astype(jnp.float32)
    support = jnp.matmul(x_flat, weight.astype(jnp.float32)).astype(jnp.bfloat16)

    support_p = jnp.zeros((B, N_pad, F_pad), jnp.bfloat16)
    support_p = support_p.at[:, :N, :F_out].set(support)
    adj_p = jnp.zeros((B, N_pad, N_pad), jnp.bfloat16)
    adj_p = adj_p.at[:, :N, :N].set(adj.astype(jnp.bfloat16))
    # TODO(synk): the read-bound adjacency stream could be compressed further
    # (int8 on v5e/v6e, fp8 e4m3 on v7x) with a per-tile scale; kept bf16 here
    # for a single portable code path.
    if bias is None:
        b_vec = jnp.zeros((F_out,), jnp.float32)
    else:
        b_vec = bias.astype(jnp.float32).reshape(F_out)
    b_pad = jnp.zeros((1, F_pad), jnp.float32).at[:, :F_out].set(b_vec)

    # Advisory cost for XLA's scheduler.
    flops = 2 * B * N_pad * N_pad * F_pad
    bytes_accessed = (B * N_pad * N_pad * 2                       # adj (bf16)
                      + B * N_pad * F_pad * 2 * (N_pad // tn)     # support re-reads
                      + B * N_pad * F_pad * 4                     # output (f32)
                      + F_pad * 4)                                # bias
    cost = pl.CostEstimate(flops=flops, transcendentals=0,
                           bytes_accessed=bytes_accessed)

    out_pad = pl.pallas_call(
        _gcn_kernel,
        out_shape=jax.ShapeDtypeStruct((B, N_pad, F_pad), jnp.float32),
        grid_spec=pltpu.PrefetchScalarGridSpec(
            num_scalar_prefetch=0,
            grid=grid,
            in_specs=[
                # support slice for the current contraction tile (batch squeezed).
                pl.BlockSpec((pl.Squeezed(), tk, F_pad),
                             lambda b, i, k: (b, k, 0)),
                # adjacency tile (rows i, contraction k).
                pl.BlockSpec((pl.Squeezed(), tn, tk),
                             lambda b, i, k: (b, i, k)),
                # shared bias, resident across the whole grid.
                pl.BlockSpec((1, F_pad), lambda b, i, k: (0, 0)),
            ],
            out_specs=pl.BlockSpec((pl.Squeezed(), tn, F_pad),
                                   lambda b, i, k: (b, i, 0)),
        ),
        compiler_params=pltpu.CompilerParams(
            dimension_semantics=("parallel", "parallel", "arbitrary"),
            vmem_limit_bytes=_VMEM_LIMIT_BYTES),
        cost_estimate=cost,
    )(support_p, adj_p, b_pad)

    # Drop the node / lane padding and restore the module's spatial layout.
    return out_pad[:, :N, :F_out].reshape(B, H, Wd, F_out)


if __name__ == "__main__":
    # Small shapes: batch=2, len_x=len_y=8 (N=64 nodes), features=32.
    B, H, W, F = 2, 8, 8, 32
    N = H * W
    in_features = F
    out_features = F  # must equal in_features for the module's final reshape

    key = jax.random.PRNGKey(0)
    k_x, k_adj, k_w, k_b = jax.random.split(key, 4)

    x = jax.random.normal(k_x, (B, H, W, in_features), dtype=jnp.float32)
    adj = jax.random.uniform(k_adj, (B, N, N), dtype=jnp.float32)

    # Deterministic init mirroring reset_parameters(): U(-stdv, stdv),
    # stdv = 1/sqrt(out_features).
    stdv = 1.0 / math.sqrt(out_features)
    weight = jax.random.uniform(k_w, (in_features, out_features),
                                minval=-stdv, maxval=stdv, dtype=jnp.float32)
    bias = jax.random.uniform(k_b, (out_features,),
                              minval=-stdv, maxval=stdv, dtype=jnp.float32)

    out = graph_convolution(x, adj, weight, bias)
    out = jax.block_until_ready(out)

    # Pure-JAX f32 reference; the kernel feeds bf16 adj/support to the MXU, so
    # compare with a normalized max-error tolerance rather than tight allclose.
    x_flat = x.reshape(B, N, in_features)
    ref = (jnp.matmul(adj, jnp.matmul(x_flat, weight)) + bias).reshape(
        B, H, W, out_features)
    assert out.shape == (B, H, W, out_features)
    rel_err = jnp.max(jnp.abs(out - ref)) / jnp.max(jnp.abs(ref))
    assert rel_err < 3e-2, f"relative error too large: {float(rel_err)}"

    print("KERNEL_OK")
</pallas_src>

<mosaic_0001>
module attributes {stable_mosaic.version = 11 : i64} {
  func.func @_gcn_kernel(%arg0: i32, %arg1: i32, %arg2: i32, %arg3: memref<1x256x128xbf16, #tpu.memory_space<vmem>>, %arg4: memref<1x256x256xbf16, #tpu.memory_space<vmem>>, %arg5: memref<1x128xf32, #tpu.memory_space<vmem>>, %arg6: memref<1x256x128xf32, #tpu.memory_space<vmem>>) attributes {dimension_semantics = [#tpu.dimension_semantics<parallel>, #tpu.dimension_semantics<parallel>, #tpu.dimension_semantics<arbitrary>], iteration_bounds = array<i64: 2, 1, 1>, scalar_prefetch = 0 : i64, scratch_operands = 0 : i64, tpu.core_type = #tpu.core_type<tc>, window_params = [{transform_indices = @transform_0, window_bounds = array<i64: 1, 256, 128>}, {transform_indices = @transform_1, window_bounds = array<i64: 1, 256, 256>}, {pipeline_mode = #tpu.pipeline_mode<synchronous>, transform_indices = @transform_2, window_bounds = array<i64: 1, 128>}, {transform_indices = @transform_3, window_bounds = array<i64: 1, 256, 128>}]} {
    %c0_i32 = arith.constant 0 : i32
    %0 = arith.cmpi eq, %arg2, %c0_i32 : i32
    %1 = arith.extui %0 : i1 to i32
    %c0_i32_0 = arith.constant 0 : i32
    %2 = arith.cmpi ne, %1, %c0_i32_0 : i32
    scf.if %2 {
      %cst_14 = arith.constant 0.000000e+00 : f32
      %17 = vector.broadcast %cst_14 : f32 to vector<256x128xf32>
      %c0_15 = arith.constant 0 : index
      %c0_16 = arith.constant 0 : index
      %c0_17 = arith.constant 0 : index
      %18 = vector.load %arg6[%c0_15, %c0_16, %c0_17] : memref<1x256x128xf32, #tpu.memory_space<vmem>>, vector<1x256x128xf32>
      %19 = vector.shape_cast %18 : vector<1x256x128xf32> to vector<256x128xf32>
      %20 = vector.shape_cast %17 : vector<256x128xf32> to vector<1x256x128xf32>
      tpu.vector_store %arg6[%c0_15, %c0_16, %c0_17], %20 {strides = array<i32>} : memref<1x256x128xf32, #tpu.memory_space<vmem>>, vector<1x256x128xf32>,
    } else {
    }
    %c0 = arith.constant 0 : index
    %c0_1 = arith.constant 0 : index
    %c0_2 = arith.constant 0 : index
    %3 = vector.load %arg6[%c0, %c0_1, %c0_2] : memref<1x256x128xf32, #tpu.memory_space<vmem>>, vector<1x256x128xf32>
    %4 = vector.shape_cast %3 : vector<1x256x128xf32> to vector<256x128xf32>
    %c0_3 = arith.constant 0 : index
    %c0_4 = arith.constant 0 : index
    %c0_5 = arith.constant 0 : index
    %5 = vector.load %arg4[%c0_3, %c0_4, %c0_5] : memref<1x256x256xbf16, #tpu.memory_space<vmem>>, vector<1x256x256xbf16>
    %6 = vector.shape_cast %5 : vector<1x256x256xbf16> to vector<256x256xbf16>
    %c0_6 = arith.constant 0 : index
    %c0_7 = arith.constant 0 : index
    %c0_8 = arith.constant 0 : index
    %7 = vector.load %arg3[%c0_6, %c0_7, %c0_8] : memref<1x256x128xbf16, #tpu.memory_space<vmem>>, vector<1x256x128xbf16>
    %8 = vector.shape_cast %7 : vector<1x256x128xbf16> to vector<256x128xbf16>
    %cst = arith.constant dense<0.000000e+00> : vector<256x128xf32>
    %9 = tpu.matmul %6, %8, %cst {dimension_numbers = #tpu.dot_dimension_numbers<[1], [0], [0], [1], [0, 0, 1, 1], [], []>} : vector<256x256xbf16>, vector<256x128xbf16>, vector<256x128xf32> -> vector<256x128xf32>
    %10 = arith.addf %4, %9 : vector<256x128xf32>
    %c0_9 = arith.constant 0 : index
    %c0_10 = arith.constant 0 : index
    %c0_11 = arith.constant 0 : index
    %11 = vector.load %arg6[%c0_9, %c0_10, %c0_11] : memref<1x256x128xf32, #tpu.memory_space<vmem>>, vector<1x256x128xf32>
    %12 = vector.shape_cast %11 : vector<1x256x128xf32> to vector<256x128xf32>
    %13 = vector.shape_cast %10 : vector<256x128xf32> to vector<1x256x128xf32>
    tpu.vector_store %arg6[%c0_9, %c0_10, %c0_11], %13 {strides = array<i32>} : memref<1x256x128xf32, #tpu.memory_space<vmem>>, vector<1x256x128xf32>,
    %c0_i32_12 = arith.constant 0 : i32
    %14 = arith.cmpi eq, %arg2, %c0_i32_12 : i32
    %15 = arith.extui %14 : i1 to i32
    %c0_i32_13 = arith.constant 0 : i32
    %16 = arith.cmpi ne, %15, %c0_i32_13 : i32
    scf.if %16 {
      %c0_14 = arith.constant 0 : index
      %c0_15 = arith.constant 0 : index
      %c0_16 = arith.constant 0 : index
      %17 = vector.load %arg6[%c0_14, %c0_15, %c0_16] : memref<1x256x128xf32, #tpu.memory_space<vmem>>, vector<1x256x128xf32>
      %18 = vector.shape_cast %17 : vector<1x256x128xf32> to vector<256x128xf32>
      %c0_17 = arith.constant 0 : index
      %c0_18 = arith.constant 0 : index
      %19 = vector.load %arg5[%c0_17, %c0_18] : memref<1x128xf32, #tpu.memory_space<vmem>>, vector<1x128xf32>
      %20 = vector.broadcast %19 : vector<1x128xf32> to vector<256x128xf32>
      %21 = arith.addf %18, %20 : vector<256x128xf32>
      %c0_19 = arith.constant 0 : index
      %c0_20 = arith.constant 0 : index
      %c0_21 = arith.constant 0 : index
      %22 = vector.load %arg6[%c0_19, %c0_20, %c0_21] : memref<1x256x128xf32, #tpu.memory_space<vmem>>, vector<1x256x128xf32>
      %23 = vector.shape_cast %22 : vector<1x256x128xf32> to vector<256x128xf32>
      %24 = vector.shape_cast %21 : vector<256x128xf32> to vector<1x256x128xf32>
      tpu.vector_store %arg6[%c0_19, %c0_20, %c0_21], %24 {strides = array<i32>} : memref<1x256x128xf32, #tpu.memory_space<vmem>>, vector<1x256x128xf32>,
    } else {
    }
    return
  }
  func.func @transform_0(%arg0: i32, %arg1: i32, %arg2: i32) -> (i32, i32, i32) {
    %c0_i32 = arith.constant 0 : i32
    %c0_i32_0 = arith.constant 0 : i32
    return %arg0, %arg2, %c0_i32 : i32, i32, i32
  }
  func.func @transform_1(%arg0: i32, %arg1: i32, %arg2: i32) -> (i32, i32, i32) {
    %c0_i32 = arith.constant 0 : i32
    return %arg0, %arg1, %arg2 : i32, i32, i32
  }
  func.func @transform_2(%arg0: i32, %arg1: i32, %arg2: i32) -> (i32, i32) {
    %c0_i32 = arith.constant 0 : i32
    %c0_i32_0 = arith.constant 0 : i32
    %c0_i32_1 = arith.constant 0 : i32
    return %c0_i32, %c0_i32_0 : i32, i32
  }
  func.func @transform_3(%arg0: i32, %arg1: i32, %arg2: i32) -> (i32, i32, i32) {
    %c0_i32 = arith.constant 0 : i32
    %c0_i32_0 = arith.constant 0 : i32
    return %arg0, %arg1, %c0_i32 : i32, i32, i32
  }
}

</mosaic_0001>

<bundles_post_ra>
// kernel: graph_convolution.1
= control target key start
LH: loop header
LB: loop body
LE: loop exit
PB: predicated region body
PF: predicated region fallthrough
CT: control target
= control target key end

     0   :  { %s1432_s12 = smov 0   ;;  %s1434_s13 = smov 0   ;;  %s1599_s0 = inlined_call_operand.vmem [shape: bf16[2,256,128], index: 0, kind: input, shape index: {}]   ;;  %s1600_s1 = inlined_call_operand.vmem [shape: bf16[2,256,256], index: 1, kind: input, shape index: {}]   ;;  %s1601_s2 = inlined_call_operand.vmem [shape: f32[1,128], index: 2, kind: input, shape index: {}]   ;;  %s1602_s3 = inlined_call_operand.vmem [shape: f32[2,256,128], index: 3, kind: output, shape index: {}]  }
   0x1   :  { %s1436_s14 = smov 0  }
   0x2 LB: > { %s32_s15 = sadd.s32 1, %s1406_s13  ;;  %p1110_p0 = scmp.ge.s32.totalorder %s1410_s14, 1  ;;  %s1410_s14 = sphi %s1436_s14, %s13_s14   ;;  %s1406_s13 = sphi %s1434_s13, %s1604_s13   ;;  %s1402_s12 = sphi %s1432_s12, %s1603_s12  }
   0x3   : > { %p34_p1 = scmp.ge.s32.totalorder %s32_s15, 2  ;;  %p190_p2 = scmp.lt.s32.totalorder %s1410_s14, 3 }
   0x5   : > { %s1606_s15 = smov (%p34_p1, %s32_s15), 0  ;;  %p191_p3 = pnand %p1110_p0, %p190_p2 }
   0x6   : > { %p237_p4 = scmp.lt.s32.totalorder (!%p191_p3), %s1402_s12, 1 }
   0x7   : > { %194 = sbr.rel (%p191_p3) target bundleno = 308 (0x134), region = 32 }
   0xc   : > { %s1608_s12 = smov (!%p237_p4, %s1402_s12), 1  ;;  %v1517_v54 = vld [vmem:[%s1601_s2] ss:$0 sm:$0xff] }
   0xd   : > { %s1168_s16 = sshll.u32 %s1608_s12, 7  ;;  %s1169_s20 = sshll.u32 %s1608_s12, 8 }
   0xe   : > { %s1456_s19 = scalar_lea.vmem %s1599_s0, %s1168_s16  ;;  %s1473_s23 = scalar_lea.vmem %s1600_s1, %s1169_s20 }
   0xf   : > { %v1324_v0 = vld [vmem:[%s1456_s19 + $0x78] sm:$0xff]   ;;  %v1326_v2 = vld [vmem:[%s1456_s19 + $0x70] sm:$0xff]   ;;  %v1328_v4 = vld [vmem:[%s1456_s19 + $0x68] sm:$0xff]   ;;  %s1524_s28 = scalar_lea.vmem %s1602_s3, %s1169_s20 }
  0x10   : > { %v1325_v1 = vld [vmem:[%s1456_s19 + $0x38] sm:$0xff]   ;;  %1171 = vmatprep.subr.bf16.mxu0 %v1324_v0  ;;  %1283 = vmatprep.subr.bf16.mxu1 %v1324_v0  ;;  %v1327_v3 = vld [vmem:[%s1456_s19 + $0x30] sm:$0xff]   ;;  %v1329_v5 = vld [vmem:[%s1456_s19 + $0x28] sm:$0xff]  }
  0x11   : > { %1172 = vmatpush3.bf16.msra.mxu0 %v1325_v1  ;;  %1291 = vmatpush3.bf16.msra.mxu1 %v1325_v1  ;;  %v1330_v6 = vld [vmem:[%s1456_s19 + $0x60] sm:$0xff]   ;;  %v1332_v8 = vld [vmem:[%s1456_s19 + $0x58] sm:$0xff]   ;;  %v1334_v10 = vld [vmem:[%s1456_s19 + $0x50] sm:$0xff]  }
  0x12   : > { %1173 = vmatprep.subr.bf16.mxu0 %v1326_v2  ;;  %1284 = vmatprep.subr.bf16.mxu1 %v1326_v2  ;;  %v1331_v7 = vld [vmem:[%s1456_s19 + $0x20] sm:$0xff]   ;;  %v1333_v9 = vld [vmem:[%s1456_s19 + $0x18] sm:$0xff]   ;;  %v1335_v13 = vld [vmem:[%s1456_s19 + $0x10] sm:$0xff]  }
  0x13   : > { %v1342_v11 = vld [vmem:[%s1473_s23 + $0x4] ss:$8 sps:$4 sm:$0xff]   ;;  %v1340_v18 = vld [vmem:[%s1473_s23] ss:$8 sps:$4 sm:$0xff]   ;;  %v1346_v20 = vld [vmem:[%s1473_s23 + $0x14] ss:$8 sps:$4 sm:$0xff]  }
  0x14   : > { %v1345_v12 = vld [vmem:[%s1473_s23 + $0x84] ss:$8 sps:$4 sm:$0xff]   ;;  %693 = vmatprep.mubr.bf16.mxu0 %v1342_v11  ;;  %v1343_v19 = vld [vmem:[%s1473_s23 + $0x80] ss:$8 sps:$4 sm:$0xff]   ;;  %v1348_v21 = vld [vmem:[%s1473_s23 + $0x94] ss:$8 sps:$4 sm:$0xff]  }
  0x15   : > { %1174 = vmatpush3.bf16.msra.mxu0 %v1327_v3  ;;  %1292 = vmatpush3.bf16.msra.mxu1 %v1327_v3  ;;  %v1336_v14 = vld [vmem:[%s1456_s19 + $0x48] sm:$0xff]   ;;  %v1338_v16 = vld [vmem:[%s1456_s19 + $0x40] sm:$0xff]   ;;  %v1350_v22 = vld [vmem:[%s1473_s23 + $0x10] ss:$8 sps:$4 sm:$0xff]  }
  0x16   : > { %1175 = vmatprep.subr.bf16.mxu0 %v1328_v4  ;;  %1285 = vmatprep.subr.bf16.mxu1 %v1328_v4  ;;  %v1337_v15 = vld [vmem:[%s1456_s19 + $0x8] sm:$0xff]   ;;  %v1339_v17 = vld [vmem:[%s1456_s19] sm:$0xff]   ;;  %v1351_v23 = vld [vmem:[%s1473_s23 + $0x90] ss:$8 sps:$4 sm:$0xff]  }
  0x17   : > { %757 = vmatprep.mubr.bf16.mxu1 %v1345_v12  ;;  %v1352_v24 = vld [vmem:[%s1473_s23 + $0x24] ss:$8 sps:$4 sm:$0xff]   ;;  %v1356_v26 = vld [vmem:[%s1473_s23 + $0x20] ss:$8 sps:$4 sm:$0xff]   ;;  %v1358_v28 = vld [vmem:[%s1473_s23 + $0x34] ss:$8 sps:$4 sm:$0xff]  }
  0x18   : > { %v1354_v25 = vld [vmem:[%s1473_s23 + $0xa4] ss:$8 sps:$4 sm:$0xff]   ;;  %v1357_v27 = vld [vmem:[%s1473_s23 + $0xa0] ss:$8 sps:$4 sm:$0xff]   ;;  %v1360_v29 = vld [vmem:[%s1473_s23 + $0xb4] ss:$8 sps:$4 sm:$0xff]  }
  0x19   : > { %1176 = vmatpush3.bf16.msra.mxu0 %v1329_v5  ;;  %1293 = vmatpush3.bf16.msra.mxu1 %v1329_v5  ;;  %v1362_v30 = vld [vmem:[%s1473_s23 + $0x30] ss:$8 sps:$4 sm:$0xff]   ;;  %v1364_v32 = vld [vmem:[%s1473_s23 + $0x44] ss:$8 sps:$4 sm:$0xff]   ;;  %v1368_v34 = vld [vmem:[%s1473_s23 + $0x40] ss:$8 sps:$4 sm:$0xff]  }
  0x1a   : > { %1177 = vmatprep.subr.bf16.mxu0 %v1330_v6  ;;  %1286 = vmatprep.subr.bf16.mxu1 %v1330_v6  ;;  %v1363_v31 = vld [vmem:[%s1473_s23 + $0xb0] ss:$8 sps:$4 sm:$0xff]   ;;  %v1366_v33 = vld [vmem:[%s1473_s23 + $0xc4] ss:$8 sps:$4 sm:$0xff]   ;;  %v1369_v35 = vld [vmem:[%s1473_s23 + $0xc0] ss:$8 sps:$4 sm:$0xff]  }
  0x1b   : > { %v1370_v36 = vld [vmem:[%s1473_s23 + $0x54] ss:$8 sps:$4 sm:$0xff]   ;;  %v1374_v38 = vld [vmem:[%s1473_s23 + $0x50] ss:$8 sps:$4 sm:$0xff]   ;;  %v1376_v40 = vld [vmem:[%s1473_s23 + $0x64] ss:$8 sps:$4 sm:$0xff]  }
  0x1c   : > { %v1372_v37 = vld [vmem:[%s1473_s23 + $0xd4] ss:$8 sps:$4 sm:$0xff]   ;;  %v1375_v39 = vld [vmem:[%s1473_s23 + $0xd0] ss:$8 sps:$4 sm:$0xff]   ;;  %v1378_v41 = vld [vmem:[%s1473_s23 + $0xe4] ss:$8 sps:$4 sm:$0xff]  }
  0x1d   : > { %1178 = vmatpush3.bf16.msra.mxu0 %v1331_v7  ;;  %1294 = vmatpush3.bf16.msra.mxu1 %v1331_v7  ;;  %v1380_v42 = vld [vmem:[%s1473_s23 + $0x60] ss:$8 sps:$4 sm:$0xff]   ;;  %v1382_v44 = vld [vmem:[%s1473_s23 + $0x74] ss:$8 sps:$4 sm:$0xff]   ;;  %v1386_v46 = vld [vmem:[%s1473_s23 + $0x70] ss:$8 sps:$4 sm:$0xff]  }
  0x1e   : > { %1179 = vmatprep.subr.bf16.mxu0 %v1332_v8  ;;  %1287 = vmatprep.subr.bf16.mxu1 %v1332_v8  ;;  %v1381_v43 = vld [vmem:[%s1473_s23 + $0xe0] ss:$8 sps:$4 sm:$0xff]   ;;  %v1384_v45 = vld [vmem:[%s1473_s23 + $0xf4] ss:$8 sps:$4 sm:$0xff]   ;;  %v1387_v47 = vld [vmem:[%s1473_s23 + $0xf0] ss:$8 sps:$4 sm:$0xff]  }
  0x21   : > { %1180 = vmatpush3.bf16.msra.mxu0 %v1333_v9  ;;  %1295 = vmatpush3.bf16.msra.mxu1 %v1333_v9 }
  0x22   : > { %1181 = vmatprep.subr.bf16.mxu0 %v1334_v10  ;;  %1288 = vmatprep.subr.bf16.mxu1 %v1334_v10 }
  0x25   : > { %1182 = vmatpush3.bf16.msra.mxu0 %v1335_v13  ;;  %1296 = vmatpush3.bf16.msra.mxu1 %v1335_v13 }
  0x26   : > { %1183 = vmatprep.subr.bf16.mxu0 %v1336_v14  ;;  %1289 = vmatprep.subr.bf16.mxu1 %v1336_v14 }
  0x29   : > { %1184 = vmatpush3.bf16.msra.mxu0 %v1337_v15  ;;  %1297 = vmatpush3.bf16.msra.mxu1 %v1337_v15 }
  0x2a   : > { %1185 = vmatprep.subr.bf16.mxu0 %v1338_v16  ;;  %1290 = vmatprep.subr.bf16.mxu1 %v1338_v16 }
  0x2d   : > { %1186 = vmatpush3.bf16.msra.mxu0 %v1339_v17  ;;  %1298 = vmatpush3.bf16.msra.mxu1 %v1339_v17 }
  0x30   : > { %694 = vmatmul.mubr.bf16.vlgmr.msra.gmra.mxu0 %v1340_v18  ;;  %758 = vmatmul.mubr.bf16.vlgmr.msra.gmra.mxu1 %v1343_v19 }
  0x31   : > { %701 = vmatprep.mubr.bf16.mxu0 %v1346_v20  ;;  %765 = vmatprep.mubr.bf16.mxu1 %v1348_v21 }
  0x38   : > { %702 = vmatmul.mubr.bf16.gmra.mxu0 %v1350_v22  ;;  %766 = vmatmul.mubr.bf16.gmra.mxu1 %v1351_v23 }
  0x39   : > { %709 = vmatprep.mubr.bf16.mxu0 %v1352_v24  ;;  %773 = vmatprep.mubr.bf16.mxu1 %v1354_v25 }
  0x40   : > { %710 = vmatmul.mubr.bf16.gmra.mxu0 %v1356_v26  ;;  %774 = vmatmul.mubr.bf16.gmra.mxu1 %v1357_v27 }
  0x41   : > { %717 = vmatprep.mubr.bf16.mxu0 %v1358_v28  ;;  %781 = vmatprep.mubr.bf16.mxu1 %v1360_v29 }
  0x48   : > { %718 = vmatmul.mubr.bf16.gmra.mxu0 %v1362_v30  ;;  %782 = vmatmul.mubr.bf16.gmra.mxu1 %v1363_v31 }
  0x49   : > { %725 = vmatprep.mubr.bf16.mxu0 %v1364_v32  ;;  %789 = vmatprep.mubr.bf16.mxu1 %v1366_v33 }
  0x50   : > { %726 = vmatmul.mubr.bf16.gmra.mxu0 %v1368_v34  ;;  %790 = vmatmul.mubr.bf16.gmra.mxu1 %v1369_v35 }
  0x51   : > { %733 = vmatprep.mubr.bf16.mxu0 %v1370_v36  ;;  %797 = vmatprep.mubr.bf16.mxu1 %v1372_v37 }
  0x58   : > { %734 = vmatmul.mubr.bf16.gmra.mxu0 %v1374_v38  ;;  %798 = vmatmul.mubr.bf16.gmra.mxu1 %v1375_v39 }
  0x59   : > { %741 = vmatprep.mubr.bf16.mxu0 %v1376_v40  ;;  %805 = vmatprep.mubr.bf16.mxu1 %v1378_v41 }
  0x60   : > { %742 = vmatmul.mubr.bf16.gmra.mxu0 %v1380_v42  ;;  %806 = vmatmul.mubr.bf16.gmra.mxu1 %v1381_v43 }
  0x61   : > { %749 = vmatprep.mubr.bf16.mxu0 %v1382_v44  ;;  %813 = vmatprep.mubr.bf16.mxu1 %v1384_v45 }
  0x68   : > { %750 = vmatmul.mubr.bf16.gmra.mxu0 %v1386_v46  ;;  %814 = vmatmul.mubr.bf16.gmra.mxu1 %v1387_v47 }
  0xf0   : > { %v1187_v48 = vpop.f32.mrf.mxu0  ;;  %v1235_v49 = vpop.f32.mrf.mxu1 }
  0xf2   : > { %v1188_v50 = vpop.f32.mrf.mxu0  ;;  %v1236_v51 = vpop.f32.mrf.mxu1 }
  0xf3   : > { %v1189_v52 = vadd.f32 %v1188_v50, %v1187_v48  ;;  %v1237_v53 = vadd.f32 %v1236_v51, %v1235_v49 }
  0xf4   : > { %v1190_v55 = vpop.f32.mrf.mxu0  ;;  %v1238_v56 = vpop.f32.mrf.mxu1 }
  0xf5   : > { %v928_v59 = vadd.f32 %v1189_v52, %v1517_v54  ;;  %v944_v60 = vadd.f32 %v1237_v53, %v1517_v54 }
  0xf6   : > { %v1191_v57 = vpop.f32.mrf.mxu0  ;;  %v1239_v58 = vpop.f32.mrf.mxu1 }
  0xf7   : > { %v1192_v61 = vadd.f32 %v1191_v57, %v1190_v55  ;;  %v1240_v62 = vadd.f32 %v1239_v58, %v1238_v56  ;;  %960 = vst [vmem:[%s1524_s28] sm:$0xff] %v928_v59  ;;  %976 = vst [vmem:[%s1524_s28 + $0x80] sm:$0xff] %v944_v60 }
  0xf8   : > { %v1193_v63 = vpop.f32.mrf.mxu0  ;;  %v1241_v0 = vpop.f32.mrf.mxu1 }
  0xf9   : > { %v929_v3 = vadd.f32 %v1192_v61, %v1517_v54  ;;  %v945_v4 = vadd.f32 %v1240_v62, %v1517_v54 }
  0xfa   : > { %v1194_v1 = vpop.f32.mrf.mxu0  ;;  %v1242_v2 = vpop.f32.mrf.mxu1 }
  0xfb   : > { %v1195_v5 = vadd.f32 %v1194_v1, %v1193_v63  ;;  %v1243_v6 = vadd.f32 %v1242_v2, %v1241_v0  ;;  %961 = vst [vmem:[%s1524_s28 + $0x8] sm:$0xff] %v929_v3  ;;  %977 = vst [vmem:[%s1524_s28 + $0x88] sm:$0xff] %v945_v4 }
  0xfc   : > { %v1196_v7 = vpop.f32.mrf.mxu0  ;;  %v1244_v8 = vpop.f32.mrf.mxu1 }
  0xfd   : > { %v930_v11 = vadd.f32 %v1195_v5, %v1517_v54  ;;  %v946_v12 = vadd.f32 %v1243_v6, %v1517_v54 }
  0xfe   : > { %v1197_v9 = vpop.f32.mrf.mxu0  ;;  %v1245_v10 = vpop.f32.mrf.mxu1 }
  0xff   : > { %v1198_v13 = vadd.f32 %v1197_v9, %v1196_v7  ;;  %v1246_v14 = vadd.f32 %v1245_v10, %v1244_v8  ;;  %962 = vst [vmem:[%s1524_s28 + $0x10] sm:$0xff] %v930_v11  ;;  %978 = vst [vmem:[%s1524_s28 + $0x90] sm:$0xff] %v946_v12 }
 0x100   : > { %v1199_v15 = vpop.f32.mrf.mxu0  ;;  %v1247_v16 = vpop.f32.mrf.mxu1 }
 0x101   : > { %v931_v19 = vadd.f32 %v1198_v13, %v1517_v54  ;;  %v947_v20 = vadd.f32 %v1246_v14, %v1517_v54 }
 0x102   : > { %v1200_v17 = vpop.f32.mrf.mxu0  ;;  %v1248_v18 = vpop.f32.mrf.mxu1 }
 0x103   : > { %v1201_v21 = vadd.f32 %v1200_v17, %v1199_v15  ;;  %v1249_v22 = vadd.f32 %v1248_v18, %v1247_v16  ;;  %963 = vst [vmem:[%s1524_s28 + $0x18] sm:$0xff] %v931_v19  ;;  %979 = vst [vmem:[%s1524_s28 + $0x98] sm:$0xff] %v947_v20 }
 0x104   : > { %v1202_v23 = vpop.f32.mrf.mxu0  ;;  %v1250_v24 = vpop.f32.mrf.mxu1 }
 0x105   : > { %v932_v27 = vadd.f32 %v1201_v21, %v1517_v54  ;;  %v948_v28 = vadd.f32 %v1249_v22, %v1517_v54 }
 0x106   : > { %v1203_v25 = vpop.f32.mrf.mxu0  ;;  %v1251_v26 = vpop.f32.mrf.mxu1 }
 0x107   : > { %v1204_v29 = vadd.f32 %v1203_v25, %v1202_v23  ;;  %v1252_v30 = vadd.f32 %v1251_v26, %v1250_v24  ;;  %964 = vst [vmem:[%s1524_s28 + $0x20] sm:$0xff] %v932_v27  ;;  %980 = vst [vmem:[%s1524_s28 + $0xa0] sm:$0xff] %v948_v28 }
 0x108   : > { %v1205_v31 = vpop.f32.mrf.mxu0  ;;  %v1253_v32 = vpop.f32.mrf.mxu1 }
 0x109   : > { %v933_v35 = vadd.f32 %v1204_v29, %v1517_v54  ;;  %v949_v36 = vadd.f32 %v1252_v30, %v1517_v54 }
 0x10a   : > { %v1206_v33 = vpop.f32.mrf.mxu0  ;;  %v1254_v34 = vpop.f32.mrf.mxu1 }
 0x10b   : > { %v1207_v37 = vadd.f32 %v1206_v33, %v1205_v31  ;;  %v1255_v38 = vadd.f32 %v1254_v34, %v1253_v32  ;;  %965 = vst [vmem:[%s1524_s28 + $0x28] sm:$0xff] %v933_v35  ;;  %981 = vst [vmem:[%s1524_s28 + $0xa8] sm:$0xff] %v949_v36 }
 0x10c   : > { %v1208_v39 = vpop.f32.mrf.mxu0  ;;  %v1256_v40 = vpop.f32.mrf.mxu1 }
 0x10d   : > { %v934_v43 = vadd.f32 %v1207_v37, %v1517_v54  ;;  %v950_v44 = vadd.f32 %v1255_v38, %v1517_v54 }
 0x10e   : > { %v1209_v41 = vpop.f32.mrf.mxu0  ;;  %v1257_v42 = vpop.f32.mrf.mxu1 }
 0x10f   : > { %v1210_v45 = vadd.f32 %v1209_v41, %v1208_v39  ;;  %v1258_v46 = vadd.f32 %v1257_v42, %v1256_v40  ;;  %966 = vst [vmem:[%s1524_s28 + $0x30] sm:$0xff] %v934_v43  ;;  %982 = vst [vmem:[%s1524_s28 + $0xb0] sm:$0xff] %v950_v44 }
 0x110   : > { %v1211_v47 = vpop.f32.mrf.mxu0  ;;  %v1259_v48 = vpop.f32.mrf.mxu1 }
 0x111   : > { %v935_v51 = vadd.f32 %v1210_v45, %v1517_v54  ;;  %v951_v52 = vadd.f32 %v1258_v46, %v1517_v54 }
 0x112   : > { %v1212_v49 = vpop.f32.mrf.mxu0  ;;  %v1260_v50 = vpop.f32.mrf.mxu1 }
 0x113   : > { %v1213_v53 = vadd.f32 %v1212_v49, %v1211_v47  ;;  %v1261_v55 = vadd.f32 %v1260_v50, %v1259_v48  ;;  %967 = vst [vmem:[%s1524_s28 + $0x38] sm:$0xff] %v935_v51  ;;  %983 = vst [vmem:[%s1524_s28 + $0xb8] sm:$0xff] %v951_v52 }
 0x114   : > { %v1214_v56 = vpop.f32.mrf.mxu0  ;;  %v1262_v57 = vpop.f32.mrf.mxu1 }
 0x115   : > { %v936_v60 = vadd.f32 %v1213_v53, %v1517_v54  ;;  %v952_v61 = vadd.f32 %v1261_v55, %v1517_v54 }
 0x116   : > { %v1215_v58 = vpop.f32.mrf.mxu0  ;;  %v1263_v59 = vpop.f32.mrf.mxu1 }
 0x117   : > { %v1216_v62 = vadd.f32 %v1215_v58, %v1214_v56  ;;  %v1264_v63 = vadd.f32 %v1263_v59, %v1262_v57  ;;  %968 = vst [vmem:[%s1524_s28 + $0x40] sm:$0xff] %v936_v60  ;;  %984 = vst [vmem:[%s1524_s28 + $0xc0] sm:$0xff] %v952_v61 }
 0x118   : > { %v1217_v0 = vpop.f32.mrf.mxu0  ;;  %v1265_v1 = vpop.f32.mrf.mxu1 }
 0x119   : > { %v937_v4 = vadd.f32 %v1216_v62, %v1517_v54  ;;  %v953_v5 = vadd.f32 %v1264_v63, %v1517_v54 }
 0x11a   : > { %v1218_v2 = vpop.f32.mrf.mxu0  ;;  %v1266_v3 = vpop.f32.mrf.mxu1 }
 0x11b   : > { %v1219_v6 = vadd.f32 %v1218_v2, %v1217_v0  ;;  %v1267_v7 = vadd.f32 %v1266_v3, %v1265_v1  ;;  %969 = vst [vmem:[%s1524_s28 + $0x48] sm:$0xff] %v937_v4  ;;  %985 = vst [vmem:[%s1524_s28 + $0xc8] sm:$0xff] %v953_v5 }
 0x11c   : > { %v1220_v8 = vpop.f32.mrf.mxu0  ;;  %v1268_v9 = vpop.f32.mrf.mxu1 }
 0x11d   : > { %v938_v12 = vadd.f32 %v1219_v6, %v1517_v54  ;;  %v954_v13 = vadd.f32 %v1267_v7, %v1517_v54 }
 0x11e   : > { %v1221_v10 = vpop.f32.mrf.mxu0  ;;  %v1269_v11 = vpop.f32.mrf.mxu1 }
 0x11f   : > { %v1222_v14 = vadd.f32 %v1221_v10, %v1220_v8  ;;  %v1270_v15 = vadd.f32 %v1269_v11, %v1268_v9  ;;  %970 = vst [vmem:[%s1524_s28 + $0x50] sm:$0xff] %v938_v12  ;;  %986 = vst [vmem:[%s1524_s28 + $0xd0] sm:$0xff] %v954_v13 }
 0x120   : > { %v1223_v16 = vpop.f32.mrf.mxu0  ;;  %v1271_v17 = vpop.f32.mrf.mxu1 }
 0x121   : > { %v939_v20 = vadd.f32 %v1222_v14, %v1517_v54  ;;  %v955_v21 = vadd.f32 %v1270_v15, %v1517_v54 }
 0x122   : > { %v1224_v18 = vpop.f32.mrf.mxu0  ;;  %v1272_v19 = vpop.f32.mrf.mxu1 }
 0x123   : > { %v1225_v22 = vadd.f32 %v1224_v18, %v1223_v16  ;;  %v1273_v23 = vadd.f32 %v1272_v19, %v1271_v17  ;;  %971 = vst [vmem:[%s1524_s28 + $0x58] sm:$0xff] %v939_v20  ;;  %987 = vst [vmem:[%s1524_s28 + $0xd8] sm:$0xff] %v955_v21 }
 0x124   : > { %v1226_v24 = vpop.f32.mrf.mxu0  ;;  %v1274_v25 = vpop.f32.mrf.mxu1 }
 0x125   : > { %v940_v28 = vadd.f32 %v1225_v22, %v1517_v54  ;;  %v956_v29 = vadd.f32 %v1273_v23, %v1517_v54 }
 0x126   : > { %v1227_v26 = vpop.f32.mrf.mxu0  ;;  %v1275_v27 = vpop.f32.mrf.mxu1 }
 0x127   : > { %v1228_v30 = vadd.f32 %v1227_v26, %v1226_v24  ;;  %v1276_v31 = vadd.f32 %v1275_v27, %v1274_v25  ;;  %972 = vst [vmem:[%s1524_s28 + $0x60] sm:$0xff] %v940_v28  ;;  %988 = vst [vmem:[%s1524_s28 + $0xe0] sm:$0xff] %v956_v29 }
 0x128   : > { %v1229_v32 = vpop.f32.mrf.mxu0  ;;  %v1277_v33 = vpop.f32.mrf.mxu1 }
 0x129   : > { %v941_v36 = vadd.f32 %v1228_v30, %v1517_v54  ;;  %v957_v37 = vadd.f32 %v1276_v31, %v1517_v54 }
 0x12a   : > { %v1230_v34 = vpop.f32.mrf.mxu0  ;;  %v1278_v35 = vpop.f32.mrf.mxu1 }
 0x12b   : > { %v1231_v38 = vadd.f32 %v1230_v34, %v1229_v32  ;;  %v1279_v39 = vadd.f32 %v1278_v35, %v1277_v33  ;;  %973 = vst [vmem:[%s1524_s28 + $0x68] sm:$0xff] %v941_v36  ;;  %989 = vst [vmem:[%s1524_s28 + $0xe8] sm:$0xff] %v957_v37 }
 0x12c   : > { %v1232_v40 = vpop.f32.mrf.mxu0  ;;  %v1280_v41 = vpop.f32.mrf.mxu1 }
 0x12d   : > { %v942_v44 = vadd.f32 %v1231_v38, %v1517_v54  ;;  %v958_v45 = vadd.f32 %v1279_v39, %v1517_v54 }
 0x12e   : > { %v1233_v42 = vpop.f32.mrf.mxu0  ;;  %v1281_v43 = vpop.f32.mrf.mxu1 }
 0x12f   : > { %v1234_v46 = vadd.f32 %v1233_v42, %v1232_v40  ;;  %v1282_v47 = vadd.f32 %v1281_v43, %v1280_v41  ;;  %974 = vst [vmem:[%s1524_s28 + $0x70] sm:$0xff] %v942_v44  ;;  %990 = vst [vmem:[%s1524_s28 + $0xf0] sm:$0xff] %v958_v45 }
 0x131   : > { %v943_v48 = vadd.f32 %v1234_v46, %v1517_v54  ;;  %v959_v49 = vadd.f32 %v1282_v47, %v1517_v54 }
 0x133   : > { %975 = vst [vmem:[%s1524_s28 + $0x78] sm:$0xff] %v943_v48  ;;  %991 = vst [vmem:[%s1524_s28 + $0xf8] sm:$0xff] %v959_v49 }
 0x134 PF: > { %s13_s14 = sadd.s32 1, %s1410_s14   ;;  %s1603_s12 = smov %s1406_s13 }
 0x135   : > { %p10_p5 = scmp.ge.s32.totalorder %s13_s14, 4   ;;  %s1604_s13 = smov %s1606_s15 }
 0x137   :  { %12 = sbr.rel (!%p10_p5) target bundleno = 2 (0x2), region = 73 }

</bundles_post_ra>
